<compile_context>
chip_gen: v7x
topology: tpu7x:2x2x1
jax: 0.10.0
libtpu: 0.0.40
codegen_flags: <defaults>
</compile_context>

<pallas_src>
import functools

import jax
import jax.numpy as jnp
import numpy as np
from jax.experimental import pallas as pl
from jax.experimental.pallas import tpu as pltpu


def graph_transformer_kernel(x_ref, wp_wT_ref, wp_b_ref, w_pos_ref,
                             pr_ref, pr_t_ref, pc_ref,
                             expand_dh_ref, expand_hd_ref,
                             wqkv_ref, inv_wT_ref, inv_b_ref,
                             out_ref, *, if_pos):
    f32 = jnp.float32
    bf16 = jnp.bfloat16
    D = wp_wT_ref.shape[1]
    n_layers = wqkv_ref.shape[0]

    pr = pr_ref[...]                 # (E, N) bf16 one-hot(rows): row gather via MXU
    pc = pc_ref[...]                 # (E, N) bf16 one-hot(cols): col gather via MXU
    pr_f = pr.astype(f32)            # hoisted once: exact f32 copy for the norm path
    pr_t = pr_t_ref[...]             # (N, E) f32  == Pr^T (scatter-add via MXU)
    expand_dh = expand_dh_ref[...]   # (D, H) f32 head-segment mask
    expand_hd = expand_hd_ref[...]   # (H, D) f32

    # embeds = dropout(W_P(x) + W_pos)
    # TODO(synk): nn.Dropout(0.1) is treated as eval-mode identity.
    emb = jnp.dot(x_ref[...], wp_wT_ref[...],
                  preferred_element_type=f32) + wp_b_ref[...]
    if if_pos:
        emb = emb + w_pos_ref[...]

    for l in range(n_layers):                       # fused GT layers (unrolled)
        # Fused Q/K/V projection on *nodes*, then one-hot gather to edges.
        qkv_nodes = jnp.dot(emb.astype(bf16), wqkv_ref[l],
                            preferred_element_type=f32)            # (N, 3D)
        q_nodes = qkv_nodes[:, :D].astype(bf16)
        kv_nodes = qkv_nodes[:, D:].astype(bf16)
        q = jnp.dot(pr, q_nodes, preferred_element_type=f32)       # (embeds @ Wq)[rows]
        kv = jnp.dot(pc, kv_nodes, preferred_element_type=f32)     # (embeds @ [Wk|Wv])[cols]
        k = kv[:, :D]
        v = kv[:, D:]

        # att[e, h] = sum_{d in head h} q[e, d] * k[e, d], clamped to [-10, 10].
        # TODO(synk): source einsum 'ehd,ehe->eh' is malformed (requires
        # E == head_dim and takes a diagonal); implemented as the intended
        # per-head dot product.
        att = jnp.clip(jnp.dot(q * k, expand_dh, preferred_element_type=f32),
                       -10.0, 10.0)                                 # (E, H)
        exp_att = jnp.exp(att)

        # zeros(N, H).index_add_(0, rows, expAtt)[rows]
        #   == Pr @ (Pr^T @ expAtt)   (factored; no dense (E, E) S matrix).
        node_sums = jnp.dot(pr_t, exp_att, preferred_element_type=f32)   # (N, H)
        norms = jnp.dot(pr_f, node_sums, preferred_element_type=f32)     # (E, H)
        att_w = exp_att * pl.reciprocal(norms + 1e-8, approx=True)

        # TODO(synk): source einsum 'eh,eht->ht' is malformed (rank mismatch
        # after unsqueeze); implemented as the intended per-head weighting of V.
        res = jnp.dot(att_w, expand_hd, preferred_element_type=f32) * v   # (E, D)

        # Source's in-place `embeds += resEmbeds` (requires E == N).
        emb = emb + res
        # TODO(synk): self.norm(resEmbeds) is computed but discarded by the
        # source when att_norm=True, so LayerNorm is omitted.

    out = jnp.dot(emb.astype(bf16), inv_wT_ref[...],
                  preferred_element_type=f32) + inv_b_ref[...]
    # TODO(synk): gnn_output=32 < 128 lanes; for production, batch graphs /
    # pad-concat so the stored last dim is lane-dense (multiple of 128).
    out_ref[...] = out.astype(out_ref.dtype)


def build_graph_constants(rows, cols, num_nodes, d_model, head):
    """Embedding-independent constants, built once on the host and reused."""
    rows = rows.astype(jnp.int32)
    cols = cols.astype(jnp.int32)
    node_ids = jnp.arange(num_nodes, dtype=jnp.int32)
    pr = (rows[:, None] == node_ids[None, :]).astype(jnp.bfloat16)   # (E, N)
    pc = (cols[:, None] == node_ids[None, :]).astype(jnp.bfloat16)   # (E, N)
    pr_t = (node_ids[:, None] == rows[None, :]).astype(jnp.float32)  # (N, E) == Pr^T
    dh = d_model // head
    head_of_d = jnp.arange(d_model, dtype=jnp.int32) // dh
    expand_dh = (head_of_d[:, None]
                 == jnp.arange(head, dtype=jnp.int32)[None, :]).astype(jnp.float32)
    expand_hd = expand_dh.T
    return pr, pr_t, pc, expand_dh, expand_hd


def prepare_params(params):
    """One-time parameter packing / dtype casts (reused across calls)."""
    wqkv = jnp.stack([
        jnp.concatenate([wq, wk, wv], axis=1)
        for wq, wk, wv in zip(params["wq"], params["wk"], params["wv"])
    ]).astype(jnp.bfloat16)                                           # (L, D, 3D)
    d_model = params["w_pos"].shape[1]
    return dict(
        wp_wT=params["wp_wT"].astype(jnp.bfloat16),
        wp_b=params["wp_b"].reshape(1, d_model).astype(jnp.float32),
        w_pos=params["w_pos"].astype(jnp.float32),
        wqkv=wqkv,
        inv_wT=params["inv_wT"].astype(jnp.bfloat16),
        inv_b=params["inv_b"].reshape(1, -1).astype(jnp.float32),
    )


def graph_transformer_forward(x, rows, cols, params, *, head, if_pos=True):
    num_nodes, _ = x.shape
    n_edges = rows.shape[0]
    d_model = params["w_pos"].shape[1]
    gnn_output = params["inv_wT"].shape[1]
    n_layers = len(params["wq"])
    # The source's `embeds += resEmbeds` adds a per-edge tensor to a per-node
    # tensor, which is only well defined when E == N.
    assert n_edges == num_nodes
    assert d_model % head == 0

    packed = prepare_params(params)
    pr, pr_t, pc, expand_dh, expand_hd = build_graph_constants(
        rows, cols, num_nodes, d_model, head)

    operands = (x.astype(jnp.bfloat16), packed["wp_wT"], packed["wp_b"],
                packed["w_pos"], pr, pr_t, pc, expand_dh, expand_hd,
                packed["wqkv"], packed["inv_wT"], packed["inv_b"])

    # Explicit VMEM budget: resident operands + output + a generous per-layer
    # activation estimate, with 2x headroom (clamped to stay valid on v7x).
    resident_bytes = sum(int(a.size) * a.dtype.itemsize for a in operands)
    resident_bytes += num_nodes * gnn_output * 4
    act_bytes = 10 * n_edges * 3 * d_model * 4
    vmem_limit = int(min(64 * 2**20, max(4 * 2**20, 2 * (resident_bytes + act_bytes))))

    kernel = functools.partial(graph_transformer_kernel, if_pos=if_pos)
    vmem = pl.BlockSpec(memory_space=pltpu.MemorySpace.VMEM)
    return pl.pallas_call(
        kernel,
        out_shape=jax.ShapeDtypeStruct((num_nodes, gnn_output), jnp.float32),
        in_specs=[vmem] * len(operands),
        out_specs=vmem,
        compiler_params=pltpu.CompilerParams(vmem_limit_bytes=vmem_limit),
    )(*operands)


def graph_transformer_reference(x, rows, cols, params, *, head, if_pos=True):
    """Pure-JAX reference of the intended forward, mirroring the kernel's
    bf16-operand / f32-accumulation matmul numerics."""
    f32, bf16 = jnp.float32, jnp.bfloat16

    def mm(a, b):
        return jnp.dot(a.astype(bf16), b.astype(bf16), preferred_element_type=f32)

    emb = mm(x, params["wp_wT"]) + params["wp_b"]
    if if_pos:
        emb = emb + params["w_pos"]
    # dropout == identity (eval mode)

    n_nodes, d_model = emb.shape
    n_edges = rows.shape[0]
    dh = d_model // head
    for wq, wk, wv in zip(params["wq"], params["wk"], params["wv"]):
        qkv_nodes = mm(emb, jnp.concatenate([wq, wk, wv], axis=1))     # (N, 3D)
        qn = qkv_nodes.astype(bf16).astype(f32)   # matches the kernel's bf16 gather
        q = qn[rows][:, :d_model]
        k = qn[cols][:, d_model:2 * d_model]
        v = qn[cols][:, 2 * d_model:]
        att = jnp.einsum("ehd,ehd->eh",
                         q.reshape(n_edges, head, dh),
                         k.reshape(n_edges, head, dh))
        att = jnp.clip(att, -10.0, 10.0)
        exp_att = jnp.exp(att)
        norms = jnp.zeros((n_nodes, head), f32).at[rows].add(exp_att)[rows]
        att_w = exp_att / (norms + 1e-8)
        res = (att_w[:, :, None] * v.reshape(n_edges, head, dh)).reshape(n_edges, d_model)
        emb = emb + res

    return mm(emb, params["inv_wT"]) + params["inv_b"]


if __name__ == "__main__":
    key = jax.random.PRNGKey(0)
    # args: num_nodes=16, gnn_input=32, att_d_model=32, gnn_output=32,
    #       head=4, gt_layers=2, if_pos=True, att_norm=True
    num_nodes, gnn_input, d_model, gnn_output = 16, 32, 32, 32
    head, n_layers = 4, 2
    n_edges = num_nodes       # E == N, required by the source's `embeds += resEmbeds`

    keys = jax.random.split(key, 8 + 3 * n_layers)
    x = jax.random.normal(keys[0], (num_nodes, gnn_input), dtype=jnp.float32)
    rows = jax.random.randint(keys[1], (n_edges,), 0, num_nodes, dtype=jnp.int32)
    cols = jax.random.randint(keys[2], (n_edges,), 0, num_nodes, dtype=jnp.int32)

    # nn.Linear default init (approx): U(-1/sqrt(fan_in), 1/sqrt(fan_in)).
    bi = 1.0 / float(np.sqrt(gnn_input))
    bo = 1.0 / float(np.sqrt(d_model))
    # nn.init.xavier_uniform_ for the GTLayer projections: U(-a, a), a = sqrt(6/(2D)).
    a = float(np.sqrt(6.0 / (2 * d_model)))
    params = dict(
        wp_wT=jax.random.uniform(keys[3], (gnn_input, d_model), jnp.float32, -bi, bi),
        wp_b=jax.random.uniform(keys[4], (d_model,), jnp.float32, -bi, bi),
        w_pos=jax.random.uniform(keys[5], (num_nodes, d_model), jnp.float32, -0.02, 0.02),
        inv_wT=jax.random.uniform(keys[6], (d_model, gnn_output), jnp.float32, -bo, bo),
        inv_b=jax.random.uniform(keys[7], (gnn_output,), jnp.float32, -bo, bo),
        wq=[jax.random.uniform(keys[8 + 3 * l + 0], (d_model, d_model),
                               jnp.float32, -a, a) for l in range(n_layers)],
        wk=[jax.random.uniform(keys[8 + 3 * l + 1], (d_model, d_model),
                               jnp.float32, -a, a) for l in range(n_layers)],
        wv=[jax.random.uniform(keys[8 + 3 * l + 2], (d_model, d_model),
                               jnp.float32, -a, a) for l in range(n_layers)],
    )

    out = graph_transformer_forward(x, rows, cols, params, head=head, if_pos=True)
    out = jax.block_until_ready(out)

    ref = graph_transformer_reference(x, rows, cols, params, head=head, if_pos=True)
    np.testing.assert_allclose(np.asarray(out), np.asarray(ref),
                               rtol=1e-2, atol=1e-2)
    print("KERNEL_OK")
</pallas_src>

<mosaic_0001>
module attributes {stable_mosaic.version = 11 : i64} {
  func.func @graph_transformer_kernel(%arg0: memref<16x32xbf16, #tpu.memory_space<vmem>>, %arg1: memref<32x32xbf16, #tpu.memory_space<vmem>>, %arg2: memref<1x32xf32, #tpu.memory_space<vmem>>, %arg3: memref<16x32xf32, #tpu.memory_space<vmem>>, %arg4: memref<16x16xbf16, #tpu.memory_space<vmem>>, %arg5: memref<16x16xf32, #tpu.memory_space<vmem>>, %arg6: memref<16x16xbf16, #tpu.memory_space<vmem>>, %arg7: memref<32x4xf32, #tpu.memory_space<vmem>>, %arg8: memref<4x32xf32, #tpu.memory_space<vmem>>, %arg9: memref<2x32x96xbf16, #tpu.memory_space<vmem>>, %arg10: memref<32x32xbf16, #tpu.memory_space<vmem>>, %arg11: memref<1x32xf32, #tpu.memory_space<vmem>>, %arg12: memref<16x32xf32, #tpu.memory_space<vmem>>) attributes {dimension_semantics = [], scalar_prefetch = 0 : i64, scratch_operands = 0 : i64, tpu.core_type = #tpu.core_type<tc>} {
    %c0 = arith.constant 0 : index
    %c0_0 = arith.constant 0 : index
    %0 = vector.load %arg4[%c0, %c0_0] : memref<16x16xbf16, #tpu.memory_space<vmem>>, vector<16x16xbf16>
    %c0_1 = arith.constant 0 : index
    %c0_2 = arith.constant 0 : index
    %1 = vector.load %arg6[%c0_1, %c0_2] : memref<16x16xbf16, #tpu.memory_space<vmem>>, vector<16x16xbf16>
    %2 = arith.extf %0 : vector<16x16xbf16> to vector<16x16xf32>
    %c0_3 = arith.constant 0 : index
    %c0_4 = arith.constant 0 : index
    %3 = vector.load %arg5[%c0_3, %c0_4] : memref<16x16xf32, #tpu.memory_space<vmem>>, vector<16x16xf32>
    %c0_5 = arith.constant 0 : index
    %c0_6 = arith.constant 0 : index
    %4 = vector.load %arg7[%c0_5, %c0_6] : memref<32x4xf32, #tpu.memory_space<vmem>>, vector<32x4xf32>
    %c0_7 = arith.constant 0 : index
    %c0_8 = arith.constant 0 : index
    %5 = vector.load %arg8[%c0_7, %c0_8] : memref<4x32xf32, #tpu.memory_space<vmem>>, vector<4x32xf32>
    %c0_9 = arith.constant 0 : index
    %c0_10 = arith.constant 0 : index
    %6 = vector.load %arg0[%c0_9, %c0_10] : memref<16x32xbf16, #tpu.memory_space<vmem>>, vector<16x32xbf16>
    %c0_11 = arith.constant 0 : index
    %c0_12 = arith.constant 0 : index
    %7 = vector.load %arg1[%c0_11, %c0_12] : memref<32x32xbf16, #tpu.memory_space<vmem>>, vector<32x32xbf16>
    %cst = arith.constant dense<0.000000e+00> : vector<16x32xf32>
    %8 = tpu.matmul %6, %7, %cst {dimension_numbers = #tpu.dot_dimension_numbers<[1], [0], [0], [1], [0, 0, 1, 1], [], []>} : vector<16x32xbf16>, vector<32x32xbf16>, vector<16x32xf32> -> vector<16x32xf32>
    %c0_13 = arith.constant 0 : index
    %c0_14 = arith.constant 0 : index
    %9 = vector.load %arg2[%c0_13, %c0_14] : memref<1x32xf32, #tpu.memory_space<vmem>>, vector<1x32xf32>
    %10 = vector.broadcast %9 : vector<1x32xf32> to vector<16x32xf32>
    %11 = arith.addf %8, %10 : vector<16x32xf32>
    %c0_15 = arith.constant 0 : index
    %c0_16 = arith.constant 0 : index
    %12 = vector.load %arg3[%c0_15, %c0_16] : memref<16x32xf32, #tpu.memory_space<vmem>>, vector<16x32xf32>
    %13 = arith.addf %11, %12 : vector<16x32xf32>
    %14 = arith.truncf %13 : vector<16x32xf32> to vector<16x32xbf16>
    %c0_17 = arith.constant 0 : index
    %c0_18 = arith.constant 0 : index
    %c0_19 = arith.constant 0 : index
    %15 = vector.load %arg9[%c0_17, %c0_18, %c0_19] : memref<2x32x96xbf16, #tpu.memory_space<vmem>>, vector<1x32x96xbf16>
    %16 = vector.shape_cast %15 : vector<1x32x96xbf16> to vector<32x96xbf16>
    %cst_20 = arith.constant dense<0.000000e+00> : vector<16x96xf32>
    %17 = tpu.matmul %14, %16, %cst_20 {dimension_numbers = #tpu.dot_dimension_numbers<[1], [0], [0], [1], [0, 0, 1, 1], [], []>} : vector<16x32xbf16>, vector<32x96xbf16>, vector<16x96xf32> -> vector<16x96xf32>
    %18 = vector.extract_strided_slice %17 {offsets = [0, 0], sizes = [16, 32], strides = [1, 1]} : vector<16x96xf32> to vector<16x32xf32>
    %19 = arith.truncf %18 : vector<16x32xf32> to vector<16x32xbf16>
    %20 = vector.extract_strided_slice %17 {offsets = [0, 32], sizes = [16, 64], strides = [1, 1]} : vector<16x96xf32> to vector<16x64xf32>
    %21 = arith.truncf %20 : vector<16x64xf32> to vector<16x64xbf16>
    %cst_21 = arith.constant dense<0.000000e+00> : vector<16x32xf32>
    %22 = tpu.matmul %0, %19, %cst_21 {dimension_numbers = #tpu.dot_dimension_numbers<[1], [0], [0], [1], [0, 0, 1, 1], [], []>} : vector<16x16xbf16>, vector<16x32xbf16>, vector<16x32xf32> -> vector<16x32xf32>
    %cst_22 = arith.constant dense<0.000000e+00> : vector<16x64xf32>
    %23 = tpu.matmul %1, %21, %cst_22 {dimension_numbers = #tpu.dot_dimension_numbers<[1], [0], [0], [1], [0, 0, 1, 1], [], []>} : vector<16x16xbf16>, vector<16x64xbf16>, vector<16x64xf32> -> vector<16x64xf32>
    %24 = vector.extract_strided_slice %23 {offsets = [0, 0], sizes = [16, 32], strides = [1, 1]} : vector<16x64xf32> to vector<16x32xf32>
    %25 = vector.extract_strided_slice %23 {offsets = [0, 32], sizes = [16, 32], strides = [1, 1]} : vector<16x64xf32> to vector<16x32xf32>
    %26 = arith.mulf %22, %24 : vector<16x32xf32>
    %cst_23 = arith.constant dense<0.000000e+00> : vector<16x4xf32>
    %27 = tpu.matmul %26, %4, %cst_23 {dimension_numbers = #tpu.dot_dimension_numbers<[1], [0], [0], [1], [0, 0, 1, 1], [], []>} : vector<16x32xf32>, vector<32x4xf32>, vector<16x4xf32> -> vector<16x4xf32>
    %cst_24 = arith.constant -1.000000e+01 : f32
    %cst_25 = arith.constant 1.000000e+01 : f32
    %28 = vector.broadcast %cst_24 : f32 to vector<16x4xf32>
    %29 = arith.maximumf %28, %27 : vector<16x4xf32>
    %30 = vector.broadcast %cst_25 : f32 to vector<16x4xf32>
    %31 = arith.minimumf %30, %29 : vector<16x4xf32>
    %32 = math.exp %31 : vector<16x4xf32>
    %cst_26 = arith.constant dense<0.000000e+00> : vector<16x4xf32>
    %33 = tpu.matmul %3, %32, %cst_26 {dimension_numbers = #tpu.dot_dimension_numbers<[1], [0], [0], [1], [0, 0, 1, 1], [], []>} : vector<16x16xf32>, vector<16x4xf32>, vector<16x4xf32> -> vector<16x4xf32>
    %cst_27 = arith.constant dense<0.000000e+00> : vector<16x4xf32>
    %34 = tpu.matmul %2, %33, %cst_27 {dimension_numbers = #tpu.dot_dimension_numbers<[1], [0], [0], [1], [0, 0, 1, 1], [], []>} : vector<16x16xf32>, vector<16x4xf32>, vector<16x4xf32> -> vector<16x4xf32>
    %cst_28 = arith.constant 9.99999993E-9 : f32
    %35 = vector.broadcast %cst_28 : f32 to vector<16x4xf32>
    %36 = arith.addf %34, %35 : vector<16x4xf32>
    %37 = tpu.reciprocal %36 {approx = true} : vector<16x4xf32> -> vector<16x4xf32>
    %38 = arith.mulf %32, %37 : vector<16x4xf32>
    %cst_29 = arith.constant dense<0.000000e+00> : vector<16x32xf32>
    %39 = tpu.matmul %38, %5, %cst_29 {dimension_numbers = #tpu.dot_dimension_numbers<[1], [0], [0], [1], [0, 0, 1, 1], [], []>} : vector<16x4xf32>, vector<4x32xf32>, vector<16x32xf32> -> vector<16x32xf32>
    %40 = arith.mulf %39, %25 : vector<16x32xf32>
    %41 = arith.addf %13, %40 : vector<16x32xf32>
    %42 = arith.truncf %41 : vector<16x32xf32> to vector<16x32xbf16>
    %c1 = arith.constant 1 : index
    %c0_30 = arith.constant 0 : index
    %c0_31 = arith.constant 0 : index
    %43 = vector.load %arg9[%c1, %c0_30, %c0_31] : memref<2x32x96xbf16, #tpu.memory_space<vmem>>, vector<1x32x96xbf16>
    %44 = vector.shape_cast %43 : vector<1x32x96xbf16> to vector<32x96xbf16>
    %cst_32 = arith.constant dense<0.000000e+00> : vector<16x96xf32>
    %45 = tpu.matmul %42, %44, %cst_32 {dimension_numbers = #tpu.dot_dimension_numbers<[1], [0], [0], [1], [0, 0, 1, 1], [], []>} : vector<16x32xbf16>, vector<32x96xbf16>, vector<16x96xf32> -> vector<16x96xf32>
    %46 = vector.extract_strided_slice %45 {offsets = [0, 0], sizes = [16, 32], strides = [1, 1]} : vector<16x96xf32> to vector<16x32xf32>
    %47 = arith.truncf %46 : vector<16x32xf32> to vector<16x32xbf16>
    %48 = vector.extract_strided_slice %45 {offsets = [0, 32], sizes = [16, 64], strides = [1, 1]} : vector<16x96xf32> to vector<16x64xf32>
    %49 = arith.truncf %48 : vector<16x64xf32> to vector<16x64xbf16>
    %cst_33 = arith.constant dense<0.000000e+00> : vector<16x32xf32>
    %50 = tpu.matmul %0, %47, %cst_33 {dimension_numbers = #tpu.dot_dimension_numbers<[1], [0], [0], [1], [0, 0, 1, 1], [], []>} : vector<16x16xbf16>, vector<16x32xbf16>, vector<16x32xf32> -> vector<16x32xf32>
    %cst_34 = arith.constant dense<0.000000e+00> : vector<16x64xf32>
    %51 = tpu.matmul %1, %49, %cst_34 {dimension_numbers = #tpu.dot_dimension_numbers<[1], [0], [0], [1], [0, 0, 1, 1], [], []>} : vector<16x16xbf16>, vector<16x64xbf16>, vector<16x64xf32> -> vector<16x64xf32>
    %52 = vector.extract_strided_slice %51 {offsets = [0, 0], sizes = [16, 32], strides = [1, 1]} : vector<16x64xf32> to vector<16x32xf32>
    %53 = vector.extract_strided_slice %51 {offsets = [0, 32], sizes = [16, 32], strides = [1, 1]} : vector<16x64xf32> to vector<16x32xf32>
    %54 = arith.mulf %50, %52 : vector<16x32xf32>
    %cst_35 = arith.constant dense<0.000000e+00> : vector<16x4xf32>
    %55 = tpu.matmul %54, %4, %cst_35 {dimension_numbers = #tpu.dot_dimension_numbers<[1], [0], [0], [1], [0, 0, 1, 1], [], []>} : vector<16x32xf32>, vector<32x4xf32>, vector<16x4xf32> -> vector<16x4xf32>
    %cst_36 = arith.constant -1.000000e+01 : f32
    %cst_37 = arith.constant 1.000000e+01 : f32
    %56 = vector.broadcast %cst_36 : f32 to vector<16x4xf32>
    %57 = arith.maximumf %56, %55 : vector<16x4xf32>
    %58 = vector.broadcast %cst_37 : f32 to vector<16x4xf32>
    %59 = arith.minimumf %58, %57 : vector<16x4xf32>
    %60 = math.exp %59 : vector<16x4xf32>
    %cst_38 = arith.constant dense<0.000000e+00> : vector<16x4xf32>
    %61 = tpu.matmul %3, %60, %cst_38 {dimension_numbers = #tpu.dot_dimension_numbers<[1], [0], [0], [1], [0, 0, 1, 1], [], []>} : vector<16x16xf32>, vector<16x4xf32>, vector<16x4xf32> -> vector<16x4xf32>
    %cst_39 = arith.constant dense<0.000000e+00> : vector<16x4xf32>
    %62 = tpu.matmul %2, %61, %cst_39 {dimension_numbers = #tpu.dot_dimension_numbers<[1], [0], [0], [1], [0, 0, 1, 1], [], []>} : vector<16x16xf32>, vector<16x4xf32>, vector<16x4xf32> -> vector<16x4xf32>
    %cst_40 = arith.constant 9.99999993E-9 : f32
    %63 = vector.broadcast %cst_40 : f32 to vector<16x4xf32>
    %64 = arith.addf %62, %63 : vector<16x4xf32>
    %65 = tpu.reciprocal %64 {approx = true} : vector<16x4xf32> -> vector<16x4xf32>
    %66 = arith.mulf %60, %65 : vector<16x4xf32>
    %cst_41 = arith.constant dense<0.000000e+00> : vector<16x32xf32>
    %67 = tpu.matmul %66, %5, %cst_41 {dimension_numbers = #tpu.dot_dimension_numbers<[1], [0], [0], [1], [0, 0, 1, 1], [], []>} : vector<16x4xf32>, vector<4x32xf32>, vector<16x32xf32> -> vector<16x32xf32>
    %68 = arith.mulf %67, %53 : vector<16x32xf32>
    %69 = arith.addf %41, %68 : vector<16x32xf32>
    %70 = arith.truncf %69 : vector<16x32xf32> to vector<16x32xbf16>
    %c0_42 = arith.constant 0 : index
    %c0_43 = arith.constant 0 : index
    %71 = vector.load %arg10[%c0_42, %c0_43] : memref<32x32xbf16, #tpu.memory_space<vmem>>, vector<32x32xbf16>
    %cst_44 = arith.constant dense<0.000000e+00> : vector<16x32xf32>
    %72 = tpu.matmul %70, %71, %cst_44 {dimension_numbers = #tpu.dot_dimension_numbers<[1], [0], [0], [1], [0, 0, 1, 1], [], []>} : vector<16x32xbf16>, vector<32x32xbf16>, vector<16x32xf32> -> vector<16x32xf32>
    %c0_45 = arith.constant 0 : index
    %c0_46 = arith.constant 0 : index
    %73 = vector.load %arg11[%c0_45, %c0_46] : memref<1x32xf32, #tpu.memory_space<vmem>>, vector<1x32xf32>
    %74 = vector.broadcast %73 : vector<1x32xf32> to vector<16x32xf32>
    %75 = arith.addf %72, %74 : vector<16x32xf32>
    %c0_47 = arith.constant 0 : index
    %c0_48 = arith.constant 0 : index
    %76 = vector.load %arg12[%c0_47, %c0_48] : memref<16x32xf32, #tpu.memory_space<vmem>>, vector<16x32xf32>
    tpu.vector_store %arg12[%c0_47, %c0_48], %75 {strides = array<i32>} : memref<16x32xf32, #tpu.memory_space<vmem>>, vector<16x32xf32>,
    return
  }
}

</mosaic_0001>

<bundles_post_ra>
// kernel: tpu_custom_call.1
= control target key start
LH: loop header
LB: loop body
LE: loop exit
PB: predicated region body
PF: predicated region fallthrough
CT: control target
= control target key end

     0   :  { %17 = vsyncpa [#allocation3], 0  ;;  %s2110_s0 = inlined_call_operand.hbm [shape: bf16[16,32], index: 0, kind: input, shape index: {}]   ;;  %s2111_s1 = inlined_call_operand.vmem [shape: bf16[32,32], index: 1, kind: input, shape index: {}]   ;;  %s2112_s2 = inlined_call_operand.vmem [shape: f32[1,32], index: 2, kind: input, shape index: {}]   ;;  %s2113_s3 = inlined_call_operand.hbm [shape: f32[16,32], index: 3, kind: input, shape index: {}]   ;;  %s2114_s4 = inlined_call_operand.hbm [shape: bf16[16,16], index: 4, kind: input, shape index: {}]   ;;  %s2115_s5 = inlined_call_operand.hbm [shape: f32[16,16], index: 5, kind: input, shape index: {}]   ;;  %s2116_s6 = inlined_call_operand.hbm [shape: bf16[16,16], index: 6, kind: input, shape index: {}]   ;;  %s2117_s7 = inlined_call_operand.vmem [shape: f32[32,4], index: 7, kind: input, shape index: {}]   ;;  %s2118_s8 = inlined_call_operand.hbm [shape: f32[4,32], index: 8, kind: input, shape index: {}]   ;;  %s2119_s9 = inlined_call_operand.vmem [shape: bf16[2,32,96], index: 9, kind: input, shape index: {}]   ;;  %s2120_s10 = inlined_call_operand.vmem [shape: bf16[32,32], index: 10, kind: input, shape index: {}]   ;;  %s2121_s11 = inlined_call_operand.vmem [shape: f32[1,32], index: 11, kind: input, shape index: {}]   ;;  %s2122_s12 = inlined_call_operand.hbm [shape: f32[16,32], index: 12, kind: output, shape index: {}]  }
   0x1   :  { %18 = vsyncpa [#allocation6], 0 }
   0x2   :  { %19 = vsyncpa [#allocation9], 0 }
   0x3   :  { %20 = vsyncpa [#allocation12], 0 }
   0x4   :  { %21 = vsyncpa [#allocation4], 0  ;;  %s1767_s21 = smov [#allocation5]   ;;  %s1603_s25 = scalar_lea.hbm %s2113_s3, 256 }
   0x5   :  { %s43_s22 = sshll.u32 %s1767_s21, 4  ;;  %p1604_p0 = scmp.ne.s32.totalorder %s2113_s3, %s1603_s25  ;;  %s44_s22 = int_to_ptr.vmem [resolvable:$true] %s43_s22 }
   0x6   :  { %p1607_p1 = scmp.lt.u32.totalorder %s1603_s25, %s2113_s3 }
   0x8   :  { %p1609_p2 = pnand %p1607_p1, %p1604_p0 }
   0xa   :  { %1612 = shalt.err (!%p1609_p2)
}
   0xb   :  { %s1613_s30 = scalar_lea.vmem %s44_s22, 256  ;;  %p1618_p4 = scmp.lt.s32.totalorder %s44_s22, %s44_s22 }
   0xc   :  { %p1614_p3 = scmp.ne.s32.totalorder %s44_s22, %s1613_s30  ;;  %p1619_p5 = scmp.lt.s32.totalorder %s1613_s30, %s1613_s30 }
   0xe   :  { %p1620_p6 = por %p1619_p5, %p1618_p4 }
  0x10   :  { %p1621_p7 = pnand %p1620_p6, %p1614_p3 }
  0x12   :  { %1624 = shalt.err (!%p1621_p7)
}
  0x13   :  { %s1768_s13 = smov 128   ;;  %s1769_s14 = smov 8  }
  0x14   :  { %49 = dma.hbm_to_vmem [thread:$0]  %s2113_s3, 256, %s44_s22, [#allocation6], %s1768_s13, %s1768_s13, %s1769_s14  }
  0x15   :  { %s1770_s17 = smov [#allocation8]   ;;  %s1771_s19 = smov [#allocation2]  }
  0x16   :  { %s67_s18 = sshll.u32 %s1770_s17, 4  ;;  %s27_s20 = sshll.u32 %s1771_s19, 4  ;;  %s68_s18 = int_to_ptr.vmem [resolvable:$true] %s67_s18  ;;  %s28_s20 = int_to_ptr.vmem [resolvable:$true] %s27_s20 }
  0x17   :  { %s1625_s24 = scalar_lea.hbm %s2115_s5, 256 }
  0x18   :  { %p1626_p8 = scmp.ne.s32.totalorder %s2115_s5, %s1625_s24  ;;  %p1629_p9 = scmp.lt.u32.totalorder %s1625_s24, %s2115_s5 }
  0x1a   :  { %p1631_p10 = pnand %p1629_p9, %p1626_p8 }
  0x1c   :  { %1634 = shalt.err (!%p1631_p10)
}
  0x1d   :  { %s1635_s3 = scalar_lea.vmem %s68_s18, 256  ;;  %p1640_p12 = scmp.lt.s32.totalorder %s68_s18, %s68_s18 }
  0x1e   :  { %p1636_p11 = scmp.ne.s32.totalorder %s68_s18, %s1635_s3  ;;  %p1641_p13 = scmp.lt.s32.totalorder %s1635_s3, %s1635_s3 }
  0x20   :  { %p1642_p0 = por %p1641_p13, %p1640_p12 }
  0x22   :  { %p1643_p1 = pnand %p1642_p0, %p1636_p11 }
  0x24   :  { %1646 = shalt.err (!%p1643_p1)
}
  0x25   :  { %73 = dma.hbm_to_vmem [thread:$0]  %s2115_s5, 256, %s68_s18, [#allocation9], %s1768_s13, %s1768_s13, %s1769_s14  }
  0x26   :  { %s1647_s16 = scalar_lea.hbm %s2110_s0, 128 }
  0x27   :  { %p1648_p2 = scmp.ne.s32.totalorder %s2110_s0, %s1647_s16  ;;  %p1651_p3 = scmp.lt.u32.totalorder %s1647_s16, %s2110_s0 }
  0x29   :  { %p1653_p4 = pnand %p1651_p3, %p1648_p2 }
  0x2b   :  { %1656 = shalt.err (!%p1653_p4)
}
  0x2c   :  { %s1657_s24 = scalar_lea.vmem %s28_s20, 128  ;;  %p1662_p6 = scmp.lt.s32.totalorder %s28_s20, %s28_s20 }
  0x2d   :  { %p1658_p5 = scmp.ne.s32.totalorder %s28_s20, %s1657_s24  ;;  %p1663_p7 = scmp.lt.s32.totalorder %s1657_s24, %s1657_s24 }
  0x2f   :  { %p1664_p8 = por %p1663_p7, %p1662_p6 }
  0x31   :  { %p1665_p9 = pnand %p1664_p8, %p1658_p5 }
  0x33   :  { %1668 = shalt.err (!%p1665_p9)
}
  0x34   :  { %s1772_s5 = smov 64   ;;  %s1773_s18 = smov 4  }
  0x35   :  { %33 = dma.hbm_to_vmem [thread:$0]  %s2110_s0, 128, %s28_s20, [#allocation3], %s1772_s5, %s1772_s5, %s1773_s18  }
  0x36   :  { %s1774_s27 = smov [#allocation7]   ;;  %s1775_s3 = smov [#allocation10]  }
  0x37   :  { %s55_s28 = sshll.u32 %s1774_s27, 4  ;;  %s79_s22 = sshll.u32 %s1775_s3, 4  ;;  %s56_s28 = int_to_ptr.vmem [resolvable:$true] %s55_s28  ;;  %s80_s22 = int_to_ptr.vmem [resolvable:$true] %s79_s22 }
  0x38   :  { %s1669_s15 = scalar_lea.hbm %s2114_s4, 128 }
  0x39   :  { %p1670_p10 = scmp.ne.s32.totalorder %s2114_s4, %s1669_s15  ;;  %p1673_p11 = scmp.lt.u32.totalorder %s1669_s15, %s2114_s4 }
  0x3b   :  { %p1675_p12 = pnand %p1673_p11, %p1670_p10 }
  0x3d   :  { %1678 = shalt.err (!%p1675_p12)
}
  0x3e   :  { %s1679_s0 = scalar_lea.vmem %s56_s28, 128  ;;  %p1684_p0 = scmp.lt.s32.totalorder %s56_s28, %s56_s28 }
  0x3f   :  { %p1680_p13 = scmp.ne.s32.totalorder %s56_s28, %s1679_s0  ;;  %p1685_p1 = scmp.lt.s32.totalorder %s1679_s0, %s1679_s0 }
  0x41   :  { %p1686_p2 = por %p1685_p1, %p1684_p0 }
  0x43   :  { %p1687_p3 = pnand %p1686_p2, %p1680_p13 }
  0x45   :  { %1690 = shalt.err (!%p1687_p3)
}
  0x46   :  { %61 = dma.hbm_to_vmem [thread:$0]  %s2114_s4, 128, %s56_s28, [#allocation6], %s1772_s5, %s1772_s5, %s1773_s18  }
  0x47   :  { %s1691_s26 = scalar_lea.hbm %s2116_s6, 128 }
  0x48   :  { %p1692_p4 = scmp.ne.s32.totalorder %s2116_s6, %s1691_s26  ;;  %p1695_p5 = scmp.lt.u32.totalorder %s1691_s26, %s2116_s6 }
  0x4a   :  { %p1697_p6 = pnand %p1695_p5, %p1692_p4 }
  0x4c   :  { %1700 = shalt.err (!%p1697_p6)
}
  0x4d   :  { %s1701_s15 = scalar_lea.vmem %s80_s22, 128  ;;  %p1706_p8 = scmp.lt.s32.totalorder %s80_s22, %s80_s22 }
  0x4e   :  { %p1702_p7 = scmp.ne.s32.totalorder %s80_s22, %s1701_s15  ;;  %p1707_p9 = scmp.lt.s32.totalorder %s1701_s15, %s1701_s15 }
  0x50   :  { %p1708_p10 = por %p1707_p9, %p1706_p8 }
  0x52   :  { %p1709_p11 = pnand %p1708_p10, %p1702_p7 }
  0x54   :  { %1712 = shalt.err (!%p1709_p11)
}
  0x55   :  { %85 = dma.hbm_to_vmem [thread:$0]  %s2116_s6, 128, %s80_s22, [#allocation9], %s1772_s5, %s1772_s5, %s1773_s18  }
  0x56   :  { %s1776_s16 = smov [#allocation11]   ;;  %s1713_s0 = scalar_lea.hbm %s2118_s8, 64 }
  0x57   :  { %s94_s17 = sshll.u32 %s1776_s16, 4  ;;  %p1714_p12 = scmp.ne.s32.totalorder %s2118_s8, %s1713_s0  ;;  %s95_s17 = int_to_ptr.vmem [resolvable:$true] %s94_s17 }
  0x58   :  { %p1717_p13 = scmp.lt.u32.totalorder %s1713_s0, %s2118_s8 }
  0x5a   :  { %p1719_p0 = pnand %p1717_p13, %p1714_p12 }
  0x5c   :  { %1722 = shalt.err (!%p1719_p0)
}
  0x5d   :  { %s1723_s26 = scalar_lea.vmem %s95_s17, 64  ;;  %p1728_p2 = scmp.lt.s32.totalorder %s95_s17, %s95_s17 }
  0x5e   :  { %p1724_p1 = scmp.ne.s32.totalorder %s95_s17, %s1723_s26  ;;  %p1729_p3 = scmp.lt.s32.totalorder %s1723_s26, %s1723_s26 }
  0x60   :  { %p1730_p4 = por %p1729_p3, %p1728_p2 }
  0x62   :  { %p1731_p5 = pnand %p1730_p4, %p1724_p1 }
  0x64   :  { %1734 = shalt.err (!%p1731_p5)
}
  0x65   :  { %97 = dma.hbm_to_vmem [thread:$0]  %s2118_s8, 64, %s95_s17, [#allocation12]  }
  0x66   :  { %1757 = dma.done.wait [#allocation3], 128  }
  0x67   :  { %1758 = vsyncadd [#allocation3], 4294967168 }
  0x68   :  { %1759 = dma.done.wait [#allocation6], 384  }
  0x69   :  { %1760 = vsyncadd [#allocation6], 4294966912 }
  0x6a   :  { %1761 = dma.done.wait [#allocation9], 384  }
  0x6b   :  { %1762 = vsyncadd [#allocation9], 4294966912 }
  0x6c   :  { %1763 = dma.done.wait [#allocation12], 64  }
  0x6d   :  { %1764 = vsyncadd [#allocation12], 4294967232  ;;  %v1777_v0 = vmov 0.0   ;;  %vm1778_vm0 = vmmov 0   ;;  %v1575_v1 = vld [vmem:[%s2111_s1] sm:$0xff]   ;;  %v1576_v2 = vld [vmem:[%s2111_s1 + $0x8] sm:$0xff]  }
  0x6e   :  { %1413 = vmatprep.subr.bf16.mxu0 %v1777_v0  ;;  %1417 = vmatprep.mubr.msk.bf16.mxu0 %vm1778_vm0, %v1777_v0  ;;  %v1577_v3 = vld [vmem:[#allocation2] sm:$0xff]   ;;  %vm166_vm1 = vcmask 261120   ;;  %v1579_v5 = vld [vmem:[%s2119_s9 + $0x8] sm:$0xff]   ;;  %v212_v12 = vld [vmem:[#allocation5 + $0x8] sm:$0xff]  ;;  %vm282_vm2 = vcmask 130048   ;;  %vm644_vm3 = vcmask 1043456  }
  0x6f   :  { %1421 = vmatprep.subr.bf16.mxu1 %v1777_v0  ;;  %1425 = vmatprep.mubr.msk.bf16.mxu1 %vm1778_vm0, %v1777_v0  ;;  %v1578_v4 = vld [vmem:[%s2119_s9] sm:$0xff]   ;;  %v211_v10 = vld [vmem:[#allocation5] sm:$0xff]  ;;  %v1970_v20 = vld [vmem:[#allocation7] sm:$0xff]   ;;  %vm637_vm4 = vcmask 31744  }
  0x70   :  { %1414 = vmatpush3.bf16.msra.mxu0 %v1575_v1  ;;  %1422 = vmatpush3.bf16.msra.mxu1 %v1578_v4  ;;  %v1312_v6 = vld [vmem:[%s2112_s2] ss:$0 sm:$0xff]  ;;  %s1779_s2 = smov 96   ;;  %v132_v25 = vld [vmem:[%s2117_s7 + $0x8] sm:$0xff]  ;;  %v1985_v28 = vld [vmem:[#allocation10] sm:$0xff]   ;;  %v127_v53 = vunpack.c.l.bf16 %v1970_v20  ;;  %v128_v57 = vunpack.c.h.bf16 %v1970_v20 }
  0x71   :  { %1415 = vmatprep.subr.bf16.mxu0 %v1777_v0  ;;  %1423 = vmatprep.subr.bf16.mxu1 %v1777_v0  ;;  %v131_v24 = vld [vmem:[%s2117_s7] sm:$0xff]  ;;  %v133_v29 = vld [vmem:[%s2117_s7 + $0x10] sm:$0xff]  ;;  %v134_v30 = vld [vmem:[%s2117_s7 + $0x18] sm:$0xff] }
  0x72   :  { %v1981_v26 = vpack.c.bf16 %v132_v25, %v131_v24  ;;  %v1995_v31 = vpack.c.bf16 %v134_v30, %v133_v29  ;;  %v2003_v42 = vld [vmem:[#allocation8] sm:$0xff]  ;;  %v2007_v52 = vld [vmem:[#allocation8 + $0x8] sm:$0xff]  ;;  %v2020_v58 = vld [vmem:[#allocation11] sm:$0xf] }
  0x73   :  { %v1582_v4 = vld [vmem:[%s2119_s9 + $0x10] sm:$0xff]  }
  0x74   :  { %1416 = vmatpush3.bf16.msra.mxu0 %v1576_v2  ;;  %1424 = vmatpush3.bf16.msra.mxu1 %v1579_v5  ;;  %v1583_v5 = vld [vmem:[%s2119_s9 + $0x18] sm:$0xff]  }
  0x75   :  { %1429 = vmatprep.subr.bf16.mxu0 %v1777_v0  ;;  %1435 = vmatprep.subr.bf16.mxu1 %v1777_v0 }
  0x77   :  { %1418 = vmatmul.mubr.msk.bf16.vlgmr.msra.gmra.mrb[0].mxu0 %vm166_vm1, %v1577_v3 }
  0x78   :  { %1431 = vmatprep.mubr.msk.bf16.mxu0 %vm1778_vm0, %v1777_v0 }
 0x14a   :  { %v204_v7 = vpop.f32.mrb[0].mxu0 }
 0x14b   :  { %v205_v8 = vadd.f32 %v1312_v6, %v204_v7  ;;  %v1419_v9 = vpop.f32.mrb[1].mxu0 }
 0x14c   :  { %v207_v11 = vpop.f32.mrb[2].mxu0 }
 0x14d   :  { %v208_v13 = vadd.f32 %v1312_v6, %v207_v11  ;;  %v1420_v14 = vpop.f32.mrb[3].mxu0  ;;  %v1961_v15 = vadd.f32 %v211_v10, %v205_v8 }
 0x14f   :  { %v1963_v16 = vadd.f32 %v212_v12, %v208_v13 }
 0x151   :  { %v215_v17 = vpack.c.bf16 %v1963_v16, %v1961_v15 }
 0x153   :  { %1426 = vmatmul.mubr.msk.bf16.vlgmr.msra.gmra.mrb[0].mxu1 %vm166_vm1, %v215_v17 }
 0x154   :  { %1437 = vmatprep.mubr.msk.bf16.mxu1 %vm1778_vm0, %v1777_v0 }
 0x226   :  { %v269_v18 = vpop.f32.mrb[0].mxu1 }
 0x227   :  { %v1427_v19 = vpop.f32.mrb[1].mxu1 }
 0x228   :  { %v272_v21 = vpop.f32.mrb[2].mxu1 }
 0x229   :  { %v276_v22 = vpack.c.bf16 %v272_v21, %v269_v18  ;;  %v1428_v23 = vpop.f32.mrb[3].mxu1 }
 0x22b   :  { %333 = vrot.lane.b32.xlu0 %v276_v22, %s1779_s2  ;;  %1430 = vmatpush3.bf16.msra.mxu0 %v276_v22 }
 0x22c   :  { %1530 = vmatprep.subr.bf16.mxu0 %v1981_v26 }
 0x22e   :  { %1432 = vmatmul.mubr.msk.bf16.vlgmr.msra.gmra.mrb[4].mxu0 %vm282_vm2, %v1970_v20 }
 0x22f   :  { %1532 = vmatpush3.bf16.msra.mxu0 %v1981_v26 }
 0x230   :  { %1534 = vmatprep.subr.bf16.mxu0 %v1995_v31 }
 0x233   :  { %1536 = vmatpush3.bf16.msra.mxu0 %v1995_v31 }
 0x29d   :  { %v334_v27 = vpop.permute.xlu0 %333 }
 0x29e   :  { %1436 = vmatpush3.bf16.msra.mxu1 %v334_v27 }
 0x29f   :  { %1466 = vmatprep.subr.msk.mxu1 %vm644_vm3, %v2020_v58 }
 0x2a1   :  { %1438 = vmatmul.mubr.msk.bf16.vlgmr.msra.gmra.mrb[4].mxu1 %vm282_vm2, %v1985_v28 }
 0x2a2   :  { %1467 = vmatpush3.msk.msra.mxu1 %vm644_vm3, %v2020_v58 }
 0x2a3   :  { %1479 = vmatprep.subr.bf16.mxu1 %v1777_v0 }
 0x301   :  { %v320_v32 = vpop.f32.mrb[4].mxu0 }
 0x302   :  { %v1433_v33 = vpop.f32.mrb[5].mxu0 }
 0x303   :  { %v323_v34 = vpop.f32.mrb[6].mxu0 }
 0x304   :  { %v1434_v35 = vpop.f32.mrb[7].mxu0 }
 0x374   :  { %v373_v36 = vpop.f32.mrb[4].mxu1 }
 0x375   :  { %v380_v37 = vmul.f32 %v373_v36, %v320_v32  ;;  %725 = vrot.lane.b32.xlu0 %v373_v36, %s1779_s2  ;;  %v1439_v38 = vpop.f32.mrb[5].mxu1 }
 0x376   :  { %v376_v39 = vpop.f32.mrb[6].mxu1 }
 0x377   :  { %v381_v40 = vmul.f32 %v376_v39, %v323_v34  ;;  %727 = vrot.lane.b32.xlu1 %v376_v39, %s1779_s2  ;;  %v1440_v41 = vpop.f32.mrb[7].mxu1  ;;  %1449 = vmatprep.mubr.msk.f32.mxu0 %vm166_vm1, %v380_v37 }
 0x379   :  { %1450 = vmatmul.mubr.msk.f32.vlgmr.msra.gmra.mrb[8].mxu0 %vm166_vm1, %v381_v40 }
 0x37a   :  { %1456 = vmatprep.mubr.msk.f32.mxu0 %vm282_vm2, %v2003_v42 }
 0x3e7   :  { %v726_v8 = vpop.permute.xlu0 %725 }
 0x3e9   :  { %v728_v6 = vpop.permute.xlu1 %727 }
 0x44c   :  { %v1451_v43 = vpop.f32.mrb[8].mxu0 }
 0x44d   :  { %v1327_v44 = vclamps-f32 %v1451_v43, 10.0  ;;  %v454_v45 = vpop.f32.mrb[9].mxu0 }
 0x44e   :  { %v1326_v46 = vclamps-f32 %v454_v45, 10.0 }
 0x44f   :  { %v469_v47 = vmul.f32 1.442695, %v1327_v44 }
 0x450   :  { %v467_v48 = vmul.f32 1.442695, %v1326_v46 }
 0x451   :  { %1587 = vpow2.f32 %v469_v47 }
 0x452   :  { %1589 = vpow2.f32 %v467_v48 }
 0x45b   :  { %v1588_v49 = vpop.eup %1587 }
 0x45c   :  { %v1590_v50 = vpop.eup %1589 }
 0x45d   :  { %v1537_v51 = vpack.c.bf16 %v1588_v49, %v1590_v50 }
 0x45f   :  { %1538 = vmatprep.subr.bf16.mxu0 %v1537_v51 }
 0x460   :  { %1540 = vmatpush3.bf16.msra.mxu0 %v1537_v51 }
 0x463   :  { %1457 = vmatmul.mubr.msk.f32.vlgmr.msra.gmra.mrb[10].mxu0 %vm282_vm2, %v2007_v52 }
 0x464   :  { %1463 = vmatprep.mubr.msk.f32.mxu0 %vm282_vm2, %v127_v53 }
 0x536   :  { %v1458_v54 = vpop.f32.mrb[10].mxu0 }
 0x537   :  { %v543_v55 = vpop.f32.mrb[11].mxu0 }
 0x538   :  { %v1541_v56 = vpack.c.bf16 %v1458_v54, %v543_v55 }
 0x53a   :  { %1542 = vmatprep.subr.bf16.mxu0 %v1541_v56 }
 0x53b   :  { %1544 = vmatpush3.bf16.msra.mxu0 %v1541_v56 }
 0x53c   :  { %1471 = vmatprep.subr.bf16.mxu0 %v1777_v0 }
 0x53e   :  { %1464 = vmatmul.mubr.msk.f32.vlgmr.msra.gmra.mrb[12].mxu0 %vm282_vm2, %v128_v57 }
 0x53f   :  { %1475 = vmatprep.mubr.msk.bf16.mxu0 %vm1778_vm0, %v1777_v0  ;;  %1472 = vmatpush3.bf16.msra.mxu0 %v1582_v4 }
 0x540   :  { %1473 = vmatprep.subr.bf16.mxu0 %v1777_v0 }
 0x543   :  { %1474 = vmatpush3.bf16.msra.mxu0 %v1583_v5 }
 0x544   :  { %1546 = vmatprep.subr.bf16.mxu0 %v1981_v26 }
 0x611   :  { %v1465_v59 = vpop.f32.mrb[12].mxu0 }
 0x612   :  { %v630_v60 = vadd.f32 1e-08, %v1465_v59  ;;  %v624_v61 = vpop.f32.mrb[13].mxu0 }
 0x613   :  { %v625_v62 = vadd.f32 1e-08, %v624_v61 }
 0x614   :  { %1591 = vrcp.f32 %v630_v60 }
 0x615   :  { %1593 = vrcp.f32 %v625_v62 }
 0x61e   :  { %v1592_v63 = vpop.eup %1591 }
 0x61f   :  { %v1594_v1 = vpop.eup %1593  ;;  %v636_v3 = vmul.f32 %v1592_v63, %v1588_v49 }
 0x620   :  { %v635_v2 = vmul.f32 %v1594_v1, %v1590_v50 }
 0x622   :  { %1468 = vmatprep.mubr.msk.f32.mxu1 %vm637_vm4, %v635_v2 }
 0x623   :  { %1469 = vmatmul.mubr.msk.f32.vlgmr.msra.gmra.mrb[8].mxu1 %vm637_vm4, %v636_v3 }
 0x624   :  { %1481 = vmatprep.mubr.msk.bf16.mxu1 %vm1778_vm0, %v1777_v0 }
 0x6f6   :  { %v1470_v7 = vpop.f32.mrb[8].mxu1 }
 0x6f7   :  { %v732_v9 = vmul.f32 %v1470_v7, %v728_v6  ;;  %v714_v10 = vpop.f32.mrb[9].mxu1 }
 0x6f8   :  { %v731_v11 = vmul.f32 %v726_v8, %v714_v10 }
 0x6f9   :  { %v2040_v12 = vadd.f32 %v732_v9, %v1963_v16 }
 0x6fa   :  { %v2043_v13 = vadd.f32 %v731_v11, %v1961_v15 }
 0x6fc   :  { %v735_v14 = vpack.c.bf16 %v2040_v12, %v2043_v13 }
 0x6fe   :  { %1476 = vmatmul.mubr.msk.bf16.vlgmr.msra.gmra.mrb[16].mxu0 %vm166_vm1, %v735_v14 }
 0x6ff   :  { %1548 = vmatpush3.bf16.msra.mxu0 %v1981_v26 }
 0x700   :  { %1550 = vmatprep.subr.bf16.mxu0 %v1995_v31 }
 0x703   :  { %1552 = vmatpush3.bf16.msra.mxu0 %v1995_v31 }
 0x7d1   :  { %v790_v17 = vpop.f32.mrb[16].mxu0 }
 0x7d2   :  { %v1477_v18 = vpop.f32.mrb[17].mxu0 }
 0x7d3   :  { %v793_v19 = vpop.f32.mrb[18].mxu0 }
 0x7d4   :  { %v797_v21 = vpack.c.bf16 %v793_v19, %v790_v17  ;;  %v1478_v16 = vpop.f32.mrb[19].mxu0 }
 0x7d6   :  { %840 = vrot.lane.b32.xlu1 %v797_v21, %s1779_s2  ;;  %1480 = vmatpush3.bf16.msra.mxu1 %v797_v21 }
 0x7d7   :  { %1485 = vmatprep.subr.bf16.mxu1 %v1777_v0 }
 0x7d9   :  { %1482 = vmatmul.mubr.msk.bf16.vlgmr.msra.gmra.mrb[12].mxu1 %vm282_vm2, %v1970_v20  ;;  %v1584_v20 = vld [vmem:[%s2120_s10] sm:$0xff]  }
 0x7da   :  { %1487 = vmatprep.mubr.msk.bf16.mxu1 %vm1778_vm0, %v1777_v0 }
 0x848   :  { %v841_v15 = vpop.permute.xlu1 %840 }
 0x849   :  { %1486 = vmatpush3.bf16.msra.mxu1 %v841_v15 }
 0x84c   :  { %1488 = vmatmul.mubr.msk.bf16.vlgmr.msra.gmra.mrb[16].mxu1 %vm282_vm2, %v1985_v28 }
 0x84d   :  { %1513 = vmatprep.mubr.msk.f32.mxu1 %vm282_vm2, %v127_v53 }
 0x8ac   :  { %v832_v22 = vpop.f32.mrb[12].mxu1 }
 0x8ad   :  { %v1483_v23 = vpop.f32.mrb[13].mxu1 }
 0x8ae   :  { %v835_v24 = vpop.f32.mrb[14].mxu1 }
 0x8af   :  { %v1484_v25 = vpop.f32.mrb[15].mxu1 }
 0x91f   :  { %v877_v26 = vpop.f32.mrb[16].mxu1 }
 0x920   :  { %v884_v27 = vmul.f32 %v877_v26, %v832_v22  ;;  %1212 = vrot.lane.b32.xlu0 %v877_v26, %s1779_s2  ;;  %v1489_v29 = vpop.f32.mrb[17].mxu1 }
 0x921   :  { %v880_v30 = vpop.f32.mrb[18].mxu1 }
 0x922   :  { %v885_v31 = vmul.f32 %v880_v30, %v835_v24  ;;  %1499 = vmatprep.mubr.msk.f32.mxu0 %vm166_vm1, %v884_v27  ;;  %1214 = vrot.lane.b32.xlu1 %v880_v30, %s1779_s2  ;;  %v1490_v32 = vpop.f32.mrb[19].mxu1 }
 0x924   :  { %1500 = vmatmul.mubr.msk.f32.vlgmr.msra.gmra.mrb[14].mxu0 %vm166_vm1, %v885_v31 }
 0x925   :  { %1506 = vmatprep.mubr.msk.f32.mxu0 %vm282_vm2, %v2003_v42 }
 0x992   :  { %v1213_v55 = vpop.permute.xlu0 %1212 }
 0x994   :  { %v1215_v53 = vpop.permute.xlu1 %1214 }
 0x9f7   :  { %v1501_v28 = vpop.f32.mrb[14].mxu0 }
 0x9f8   :  { %v1347_v33 = vclamps-f32 %v1501_v28, 10.0  ;;  %v958_v34 = vpop.f32.mrb[15].mxu0 }
 0x9f9   :  { %v1346_v35 = vclamps-f32 %v958_v34, 10.0 }
 0x9fa   :  { %v973_v36 = vmul.f32 1.442695, %v1347_v33 }
 0x9fb   :  { %v971_v37 = vmul.f32 1.442695, %v1346_v35 }
 0x9fc   :  { %1595 = vpow2.f32 %v973_v36 }
 0x9fd   :  { %1597 = vpow2.f32 %v971_v37 }
 0xa06   :  { %v1596_v38 = vpop.eup %1595 }
 0xa07   :  { %v1598_v39 = vpop.eup %1597 }
 0xa08   :  { %v1553_v40 = vpack.c.bf16 %v1596_v38, %v1598_v39 }
 0xa0a   :  { %1554 = vmatprep.subr.bf16.mxu0 %v1553_v40 }
 0xa0b   :  { %1556 = vmatpush3.bf16.msra.mxu0 %v1553_v40 }
 0xa0c   :  { %1516 = vmatprep.subr.msk.mxu0 %vm644_vm3, %v2020_v58 }
 0xa0e   :  { %1507 = vmatmul.mubr.msk.f32.vlgmr.msra.gmra.mrb[20].mxu0 %vm282_vm2, %v2007_v52  ;;  %v1585_v52 = vld [vmem:[%s2120_s10 + $0x8] sm:$0xff]   ;;  %s1780_s10 = smov [#allocation13]  }
 0xa0f   :  { %1517 = vmatpush3.msk.msra.mxu0 %vm644_vm3, %v2020_v58  ;;  %s1297_s27 = sshll.u32 %s1780_s10, 4  ;;  %s1298_s27 = int_to_ptr.vmem [resolvable:$true] %s1297_s27 }
 0xa10   :  { %s1735_s3 = scalar_lea.vmem %s1298_s27, 256  ;;  %p1740_p7 = scmp.lt.s32.totalorder %s1298_s27, %s1298_s27 }
 0xa11   :  { %p1736_p6 = scmp.ne.s32.totalorder %s1298_s27, %s1735_s3  ;;  %p1741_p8 = scmp.lt.s32.totalorder %s1735_s3, %s1735_s3 }
 0xa13   :  { %p1742_p9 = por %p1741_p8, %p1740_p7 }
 0xa15   :  { %p1743_p10 = pnand %p1742_p9, %p1736_p6 }
 0xae1   :  { %v1508_v41 = vpop.f32.mrb[20].mxu0 }
 0xae2   :  { %v1041_v42 = vpop.f32.mrb[21].mxu0 }
 0xae3   :  { %v1557_v43 = vpack.c.bf16 %v1508_v41, %v1041_v42 }
 0xae5   :  { %1558 = vmatprep.subr.bf16.mxu1 %v1557_v43 }
 0xae6   :  { %1560 = vmatpush3.bf16.msra.mxu1 %v1557_v43 }
 0xae7   :  { %1521 = vmatprep.subr.bf16.mxu1 %v1777_v0 }
 0xae9   :  { %1514 = vmatmul.mubr.msk.f32.vlgmr.msra.gmra.mrb[10].mxu1 %vm282_vm2, %v128_v57 }
 0xaea   :  { %1525 = vmatprep.mubr.msk.bf16.mxu1 %vm1778_vm0, %v1777_v0  ;;  %1522 = vmatpush3.bf16.msra.mxu1 %v1584_v20 }
 0xaeb   :  { %1523 = vmatprep.subr.bf16.mxu1 %v1777_v0  ;;  %v1355_v0 = vld [vmem:[%s2121_s11] ss:$0 sm:$0xff] }
 0xaee   :  { %1524 = vmatpush3.bf16.msra.mxu1 %v1585_v52 }
 0xbbc   :  { %v1515_v44 = vpop.f32.mrb[10].mxu1 }
 0xbbd   :  { %v1122_v45 = vadd.f32 1e-08, %v1515_v44  ;;  %v1116_v46 = vpop.f32.mrb[11].mxu1 }
 0xbbe   :  { %v1117_v47 = vadd.f32 1e-08, %v1116_v46 }
 0xbbf   :  { %1599 = vrcp.f32 %v1122_v45 }
 0xbc0   :  { %1601 = vrcp.f32 %v1117_v47 }
 0xbc9   :  { %v1600_v48 = vpop.eup %1599 }
 0xbca   :  { %v1602_v49 = vpop.eup %1601  ;;  %v1128_v51 = vmul.f32 %v1600_v48, %v1596_v38 }
 0xbcb   :  { %v1127_v50 = vmul.f32 %v1602_v49, %v1598_v39 }
 0xbcd   :  { %1518 = vmatprep.mubr.msk.f32.mxu0 %vm637_vm4, %v1127_v50 }
 0xbce   :  { %1519 = vmatmul.mubr.msk.f32.vlgmr.msra.gmra.mrb[22].mxu0 %vm637_vm4, %v1128_v51 }
 0xca1   :  { %v1520_v54 = vpop.f32.mrb[22].mxu0 }
 0xca2   :  { %v1219_v56 = vmul.f32 %v1520_v54, %v1215_v53  ;;  %v1201_v57 = vpop.f32.mrb[23].mxu0 }
 0xca3   :  { %v1218_v58 = vmul.f32 %v1213_v55, %v1201_v57 }
 0xca4   :  { %v1221_v59 = vadd.f32 %v1219_v56, %v2040_v12 }
 0xca5   :  { %v1220_v60 = vadd.f32 %v1218_v58, %v2043_v13 }
 0xca7   :  { %v1222_v61 = vpack.c.bf16 %v1221_v59, %v1220_v60 }
 0xca9   :  { %1526 = vmatmul.mubr.msk.bf16.vlgmr.msra.gmra.mrb[20].mxu1 %vm166_vm1, %v1222_v61 }
 0xd7c   :  { %v1283_v62 = vpop.f32.mrb[20].mxu1 }
 0xd7d   :  { %v1284_v63 = vadd.f32 %v1355_v0, %v1283_v62  ;;  %v1527_v1 = vpop.f32.mrb[21].mxu1 }
 0xd7e   :  { %v1286_v2 = vpop.f32.mrb[22].mxu1 }
 0xd7f   :  { %1290 = vst.msk [vmem:[#allocation13] sm:$0xff] %vm166_vm1, %v1284_v63  ;;  %v1287_v3 = vadd.f32 %v1355_v0, %v1286_v2  ;;  %v1528_v4 = vpop.f32.mrb[23].mxu1 }
 0xd81   :  { %1291 = vst.msk [vmem:[#allocation13 + $0x8] sm:$0xff] %vm166_vm1, %v1287_v3 }
 0xd82   :  { %1746 = shalt.err (!%p1743_p10)
}
 0xd83   :  { %s1747_s1 = scalar_lea.hbm %s2122_s12, 256 }
 0xd84   :  { %p1748_p11 = scmp.ne.s32.totalorder %s2122_s12, %s1747_s1  ;;  %p1751_p12 = scmp.lt.u32.totalorder %s1747_s1, %s2122_s12 }
 0xd86   :  { %p1753_p13 = pnand %p1751_p12, %p1748_p11 }
 0xd88   :  { %1756 = shalt.err (!%p1753_p13)
}
 0xd89   :  { %1303 = dma.vmem_to_hbm [thread:$0]  %s1298_s27, 256, %s2122_s12, [#allocation4], %s1768_s13, %s1768_s13, %s1769_s14  }
 0xd8a   :  { %1765 = dma.done.wait [#allocation4], 256  }
 0xd8b   :  { %1766 = vsyncadd [#allocation4], 4294967040 }
 0xd8c   :  { %1307 = vsyncpa [#allocation3], 1 }
 0xd8d   :  { %1308 = vsyncpa [#allocation6], 1 }
 0xd8e   :  { %1309 = vsyncpa [#allocation9], 1 }
 0xd8f   :  { %1310 = vsyncpa [#allocation12], 1 }
 0xd90   :  { %1311 = vsyncpa [#allocation4], 1 }

</bundles_post_ra>
